<compile_context>
chip_gen: v6e
topology: v6e:2x2x1
jax: 0.10.0
libtpu: 0.0.40
codegen_flags: <defaults>
</compile_context>

<pallas_src>
import jax
import jax.numpy as jnp
from jax.experimental import pallas as pl
from jax.experimental.pallas import tpu as pltpu

IN_FEATURES = 16
OUT_FEATURES = 32
PACK = 8                              # rows packed into the 128-wide lane dim
PACKED_IN = PACK * IN_FEATURES        # 128
PACKED_OUT = PACK * OUT_FEATURES      # 256
DEFAULT_TILE_PACKED_ROWS = 1024       # = 8192 original rows per grid step


def _linear_kernel(x_ref, w_ref, b_ref, o_ref):
    # x_ref: [TBp, 128]  8 original rows packed per packed-row (lane-dense)
    # w_ref: [128, 256]  block-diagonal W^T copies, natural [K, N] layout (resident)
    # b_ref: [1, 256]    bias tiled 8x (resident)
    # o_ref: [TBp, 256]  lane-dense -> unmasked full-width stores
    acc = jnp.dot(x_ref[...], w_ref[...], preferred_element_type=jnp.float32)
    o_ref[...] = (acc + b_ref[...]).astype(o_ref.dtype)


def linear_pallas(x, weight, bias, tile_packed_rows=DEFAULT_TILE_PACKED_ROWS):
    """y = x @ weight.T + bias   (exact nn.Linear(16, 32) semantics).

    x:      [B, 16] float32
    weight: [32, 16] (native PyTorch layout)
    bias:   [32]
    """
    B, K = x.shape
    assert K == IN_FEATURES
    assert weight.shape == (OUT_FEATURES, IN_FEATURES)
    assert bias.shape == (OUT_FEATURES,)

    # ---- lane-dense packing: 8 rows -> one 128-wide packed row --------------
    # Free row-major reshape when B % 8 == 0; otherwise pad at most 7 rows.
    b_pack = -(-B // PACK) * PACK
    xp = x if b_pack == B else jnp.pad(x, ((0, b_pack - B), (0, 0)))
    xp = xp.reshape(b_pack // PACK, PACKED_IN)
    rows = xp.shape[0]

    # Block-diagonal weight [128, 256]: packed_row @ W2 == 8 independent
    # x_row @ W^T products.  One-time ~128 KB construction, pre-transposed so
    # the kernel RHS is already [K, N] (no in-kernel XLU relayout per step).
    w_packed = jnp.kron(jnp.eye(PACK, dtype=weight.dtype), weight.T)
    b_packed = jnp.tile(bias, PACK).reshape(1, PACKED_OUT)

    # ---- tile selection ------------------------------------------------------
    if rows <= 2 * PACK:
        tbp = rows                      # tiny batch: single block = full array
    else:
        # >= 2 grid steps so the "parallel" axis spans both TCs on v7x, capped
        # at DEFAULT_TILE_PACKED_ROWS so double-buffered VMEM stays small.
        half = -(-rows // 2)
        tbp = min(tile_packed_rows, -(-half // PACK) * PACK)
    grid_n = pl.cdiv(rows, tbp)         # ragged last block handled by Pallas

    cost = pl.CostEstimate(
        flops=2 * B * IN_FEATURES * OUT_FEATURES,
        transcendentals=0,
        bytes_accessed=4 * (B * IN_FEATURES + B * OUT_FEATURES
                            + PACKED_IN * PACKED_OUT + PACKED_OUT),
    )

    out = pl.pallas_call(
        _linear_kernel,
        out_shape=jax.ShapeDtypeStruct((rows, PACKED_OUT), x.dtype),
        grid=(grid_n,),
        in_specs=[
            pl.BlockSpec((tbp, PACKED_IN), lambda i: (i, 0)),         # tiled x
            pl.BlockSpec((PACKED_IN, PACKED_OUT), lambda i: (0, 0)),  # resident W2
            pl.BlockSpec((1, PACKED_OUT), lambda i: (0, 0)),          # resident bias
        ],
        out_specs=pl.BlockSpec((tbp, PACKED_OUT), lambda i: (i, 0)),
        compiler_params=pltpu.CompilerParams(
            dimension_semantics=("parallel",),   # shard batch tiles across TCs
        ),
        cost_estimate=cost,
    )(xp, w_packed, b_packed)

    # Free row-major reshape back to [B, 32]; slice only if we padded.
    y = out.reshape(b_pack, OUT_FEATURES)
    return y if b_pack == B else y[:B]


if __name__ == "__main__":
    key = jax.random.PRNGKey(0)
    kx, kw, kb = jax.random.split(key, 3)

    batch = 8
    x = jax.random.normal(kx, (batch, IN_FEATURES), dtype=jnp.float32)

    # Deterministic params (PyTorch layout: weight [out, in], bias [out])
    bound = 1.0 / (IN_FEATURES ** 0.5)
    weight = jax.random.uniform(
        kw, (OUT_FEATURES, IN_FEATURES), dtype=jnp.float32,
        minval=-bound, maxval=bound)
    bias = jax.random.uniform(
        kb, (OUT_FEATURES,), dtype=jnp.float32, minval=-bound, maxval=bound)

    y = linear_pallas(x, weight, bias)
    y = jax.block_until_ready(y)

    # Reference check (nn.Linear semantics)
    y_ref = x @ weight.T + bias
    assert y.shape == (batch, OUT_FEATURES)
    assert jnp.allclose(y, y_ref, atol=1e-5, rtol=1e-5)

    print("KERNEL_OK")
</pallas_src>

<mosaic_0001>
module attributes {stable_mosaic.version = 11 : i64} {
  func.func @_linear_kernel(%arg0: i32, %arg1: memref<1x128xf32, #tpu.memory_space<vmem>>, %arg2: memref<128x256xf32, #tpu.memory_space<vmem>>, %arg3: memref<1x256xf32, #tpu.memory_space<vmem>>, %arg4: memref<1x256xf32, #tpu.memory_space<vmem>>) attributes {dimension_semantics = [#tpu.dimension_semantics<parallel>], iteration_bounds = array<i64: 1>, scalar_prefetch = 0 : i64, scratch_operands = 0 : i64, tpu.core_type = #tpu.core_type<tc>, window_params = [{transform_indices = @transform_0, window_bounds = array<i64: 1, 128>}, {pipeline_mode = #tpu.pipeline_mode<synchronous>, transform_indices = @transform_1, window_bounds = array<i64: 128, 256>}, {pipeline_mode = #tpu.pipeline_mode<synchronous>, transform_indices = @transform_2, window_bounds = array<i64: 1, 256>}, {transform_indices = @transform_3, window_bounds = array<i64: 1, 256>}]} {
    %c0 = arith.constant 0 : index
    %c0_0 = arith.constant 0 : index
    %0 = vector.load %arg1[%c0, %c0_0] : memref<1x128xf32, #tpu.memory_space<vmem>>, vector<1x128xf32>
    %c0_1 = arith.constant 0 : index
    %c0_2 = arith.constant 0 : index
    %1 = vector.load %arg2[%c0_1, %c0_2] : memref<128x256xf32, #tpu.memory_space<vmem>>, vector<128x256xf32>
    %cst = arith.constant dense<0.000000e+00> : vector<1x256xf32>
    %2 = tpu.matmul %0, %1, %cst {dimension_numbers = #tpu.dot_dimension_numbers<[1], [0], [0], [1], [0, 0, 1, 1], [], []>} : vector<1x128xf32>, vector<128x256xf32>, vector<1x256xf32> -> vector<1x256xf32>
    %c0_3 = arith.constant 0 : index
    %c0_4 = arith.constant 0 : index
    %3 = vector.load %arg3[%c0_3, %c0_4] : memref<1x256xf32, #tpu.memory_space<vmem>>, vector<1x256xf32>
    %4 = arith.addf %2, %3 : vector<1x256xf32>
    %c0_5 = arith.constant 0 : index
    %c0_6 = arith.constant 0 : index
    %5 = vector.load %arg4[%c0_5, %c0_6] : memref<1x256xf32, #tpu.memory_space<vmem>>, vector<1x256xf32>
    tpu.vector_store %arg4[%c0_5, %c0_6], %4 {strides = array<i32>} : memref<1x256xf32, #tpu.memory_space<vmem>>, vector<1x256xf32>,
    return
  }
  func.func @transform_0(%arg0: i32) -> (i32, i32) {
    %c0_i32 = arith.constant 0 : i32
    %c0_i32_0 = arith.constant 0 : i32
    return %arg0, %c0_i32 : i32, i32
  }
  func.func @transform_1(%arg0: i32) -> (i32, i32) {
    %c0_i32 = arith.constant 0 : i32
    %c0_i32_0 = arith.constant 0 : i32
    %c0_i32_1 = arith.constant 0 : i32
    return %c0_i32, %c0_i32_0 : i32, i32
  }
  func.func @transform_2(%arg0: i32) -> (i32, i32) {
    %c0_i32 = arith.constant 0 : i32
    %c0_i32_0 = arith.constant 0 : i32
    %c0_i32_1 = arith.constant 0 : i32
    return %c0_i32, %c0_i32_0 : i32, i32
  }
  func.func @transform_3(%arg0: i32) -> (i32, i32) {
    %c0_i32 = arith.constant 0 : i32
    %c0_i32_0 = arith.constant 0 : i32
    return %arg0, %c0_i32 : i32, i32
  }
}

</mosaic_0001>

<bundles_post_ra>
// kernel: tpu_custom_call.1
= control target key start
LH: loop header
LB: loop body
LE: loop exit
PB: predicated region body
PF: predicated region fallthrough
CT: control target
= control target key end

     0   :  { %8 = vsyncpa [#allocation3], 0  ;;  %s308_s0 = inlined_call_operand.hbm [shape: f32[1,128], index: 0, kind: input, shape index: {}]   ;;  %s309_s1 = inlined_call_operand.hbm [shape: f32[128,256], index: 1, kind: input, shape index: {}]   ;;  %s310_s2 = inlined_call_operand.vmem [shape: f32[1,256], index: 2, kind: input, shape index: {}]   ;;  %s311_s3 = inlined_call_operand.hbm [shape: f32[1,256], index: 3, kind: output, shape index: {}]  }
   0x1   :  { %9 = vsyncpa [#allocation6], 0 }
   0x2   :  { %10 = vsyncpa [#allocation4], 0  ;;  %s269_s12 = smov [#allocation2]   ;;  %s270_s14 = smov [#allocation5]  }
   0x3   :  { %s17_s13 = sshll.u32 %s269_s12, 4  ;;  %s26_s15 = sshll.u32 %s270_s14, 4  ;;  %s18_s13 = int_to_ptr.vmem [resolvable:$true] %s17_s13  ;;  %s27_s15 = int_to_ptr.vmem [resolvable:$true] %s26_s15 }
   0x4   :  { %s211_s16 = scalar_lea.vmem %s18_s13, 16  ;;  %s215_s17 = scalar_lea.vmem %s18_s13, 32 }
   0x5   :  { %p212_p0 = scmp.ne.s32.totalorder %s18_s13, %s211_s16  ;;  %p216_p1 = scmp.lt.s32.totalorder %s18_s13, %s18_s13 }
   0x6   :  { %p217_p2 = scmp.lt.s32.totalorder %s215_s17, %s211_s16 }
   0x8   :  { %p218_p3 = por %p217_p2, %p216_p1 }
   0xa   :  { %p219_p4 = pnand %p218_p3, %p212_p0 }
   0xc   :  { %222 = shalt.err (!%p219_p4)
}
   0xd   :  { %20 = dma.hbm_to_vmem [thread:$0]  %s308_s0, 16, %s18_s13, [#allocation3]  }
   0xe   :  { %s231_s20 = scalar_lea.vmem %s27_s15, 4096  ;;  %p236_p6 = scmp.lt.s32.totalorder %s27_s15, %s27_s15 }
   0xf   :  { %p232_p5 = scmp.ne.s32.totalorder %s27_s15, %s231_s20  ;;  %p237_p7 = scmp.lt.s32.totalorder %s231_s20, %s231_s20 }
  0x11   :  { %p238_p8 = por %p237_p7, %p236_p6 }
  0x13   :  { %p239_p9 = pnand %p238_p8, %p232_p5 }
  0x15   :  { %242 = shalt.err (!%p239_p9)
}
  0x16   :  { %s271_s21 = smov 256   ;;  %s272_s22 = smov 16  }
  0x17   :  { %32 = dma.hbm_to_vmem [thread:$0]  %s309_s1, 4096, %s27_s15, [#allocation6], %s271_s21, %s271_s21, %s272_s22  }
  0x18   :  { %263 = dma.done.wait [#allocation3], 16  }
  0x19   :  { %264 = vsyncadd [#allocation3], 4294967280 }
  0x1a   :  { %265 = dma.done.wait [#allocation6], 4096  }
  0x1b   :  { %266 = vsyncadd [#allocation6], 4294963200  ;;  %v273_v0 = vmov 0.0   ;;  %v73_v1 = vld [vmem:[#allocation5 + $0xf8] sm:$0xff]  ;;  %v72_v2 = vld [vmem:[#allocation5 + $0xf0] sm:$0xff]  ;;  %v76_v34 = vlaneseq  ;;  %s275_s25 = smov [#allocation7]  }
  0x1c   :  { %150 = vmatprep.mubr.f32.mxu0 %v273_v0  ;;  %v71_v3 = vld [vmem:[#allocation5 + $0xe8] sm:$0xff]  ;;  %86 = vmatprep.subr.mxu0 %v73_v1  ;;  %v70_v4 = vld [vmem:[#allocation5 + $0xe0] sm:$0xff]  ;;  %v69_v5 = vld [vmem:[#allocation5 + $0xd8] sm:$0xff]  ;;  %v274_v38 = vmov 1966171168   ;;  %s186_s26 = sshll.u32 %s275_s25, 4  ;;  %s187_s26 = int_to_ptr.vmem [resolvable:$true] %s186_s26 }
  0x1d   :  { %87 = vmatpush1.msra.mxu0 %v72_v2  ;;  %v68_v6 = vld [vmem:[#allocation5 + $0xd0] sm:$0xff]  ;;  %v67_v7 = vld [vmem:[#allocation5 + $0xc8] sm:$0xff]  ;;  %v66_v8 = vld [vmem:[#allocation5 + $0xc0] sm:$0xff]  ;;  %v77_v35 = vshrl.u32 %v76_v34, 7  ;;  %v161_v39 = vunpack.c.l.s4 %v274_v38  ;;  %vm177_vm0 = vcmp.lt.s32.totalorder %v76_v34, 256  ;;  %s243_s27 = scalar_lea.vmem %s187_s26, 32  ;;  %p248_p11 = scmp.lt.s32.totalorder %s187_s26, %s187_s26 }
  0x1e   :  { %88 = vmatprep.subr.mxu0 %v71_v3  ;;  %v65_v9 = vld [vmem:[#allocation5 + $0xb8] sm:$0xff]  ;;  %v64_v10 = vld [vmem:[#allocation5 + $0xb0] sm:$0xff]  ;;  %v63_v11 = vld [vmem:[#allocation5 + $0xa8] sm:$0xff]  ;;  %p244_p10 = scmp.ne.s32.totalorder %s187_s26, %s243_s27  ;;  %p249_p12 = scmp.lt.s32.totalorder %s243_s27, %s243_s27 }
  0x1f   :  { %89 = vmatpush1.msra.mxu0 %v70_v4  ;;  %v62_v12 = vld [vmem:[#allocation5 + $0xa0] sm:$0xff]  ;;  %v61_v13 = vld [vmem:[#allocation5 + $0x98] sm:$0xff]  ;;  %v60_v14 = vld [vmem:[#allocation5 + $0x90] sm:$0xff]  ;;  %v78_v36 = vsub.s32 0, %v77_v35  ;;  %v82_v37 = vsub.s32 1, %v77_v35  ;;  %v162_v43 = vunpack.c.0.s8 %v161_v39 }
  0x20   :  { %90 = vmatprep.subr.mxu0 %v69_v5  ;;  %v59_v15 = vld [vmem:[#allocation5 + $0x88] sm:$0xff]  ;;  %v58_v16 = vld [vmem:[#allocation5 + $0x80] sm:$0xff]  ;;  %v57_v17 = vld [vmem:[#allocation5 + $0x78] sm:$0xff]  ;;  %p250_p13 = por %p249_p12, %p248_p11 }
  0x21   :  { %91 = vmatpush1.msra.mxu0 %v68_v6  ;;  %v56_v18 = vld [vmem:[#allocation5 + $0x70] sm:$0xff]  ;;  %v55_v19 = vld [vmem:[#allocation5 + $0x68] sm:$0xff]  ;;  %v54_v20 = vld [vmem:[#allocation5 + $0x60] sm:$0xff]  ;;  %v165_v48 = vsub.s32 %v162_v43, %v77_v35 }
  0x22   :  { %92 = vmatprep.subr.mxu0 %v67_v7  ;;  %v53_v21 = vld [vmem:[#allocation5 + $0x58] sm:$0xff]  ;;  %v52_v22 = vld [vmem:[#allocation5 + $0x50] sm:$0xff]  ;;  %v51_v23 = vld [vmem:[#allocation5 + $0x48] sm:$0xff]  ;;  %p251_p0 = pnand %p250_p13, %p244_p10 }
  0x23   :  { %93 = vmatpush1.msra.mxu0 %v66_v8  ;;  %v50_v24 = vld [vmem:[#allocation5 + $0x40] sm:$0xff]  ;;  %v49_v25 = vld [vmem:[#allocation5 + $0x38] sm:$0xff]  ;;  %v48_v26 = vld [vmem:[#allocation5 + $0x30] sm:$0xff] }
  0x24   :  { %94 = vmatprep.subr.mxu0 %v65_v9  ;;  %v47_v27 = vld [vmem:[#allocation5 + $0x28] sm:$0xff]  ;;  %v46_v28 = vld [vmem:[#allocation5 + $0x20] sm:$0xff]  ;;  %v45_v29 = vld [vmem:[#allocation5 + $0x18] sm:$0xff] }
  0x25   :  { %95 = vmatpush1.msra.mxu0 %v64_v10  ;;  %v44_v30 = vld [vmem:[#allocation5 + $0x10] sm:$0xff]  ;;  %v43_v31 = vld [vmem:[#allocation5 + $0x8] sm:$0xff]  ;;  %v42_v32 = vld [vmem:[#allocation5] sm:$0xff] }
  0x26   :  { %96 = vmatprep.subr.mxu0 %v63_v11  ;;  %v41_v33 = vld [vmem:[#allocation2] sm:$0x1] }
  0x27   :  { %97 = vmatpush1.msra.mxu0 %v62_v12  ;;  %v74_v40 = vld [vmem:[%s310_s2] sm:$0x3] }
  0x28   :  { %98 = vmatprep.subr.mxu0 %v61_v13  ;;  %v79_v41 = vrot.slane %v74_v40, %v78_v36  ;;  %v83_v42 = vrot.slane %v74_v40, %v82_v37 }
  0x29   :  { %99 = vmatpush1.msra.mxu0 %v60_v14 }
  0x2a   :  { %100 = vmatprep.subr.mxu0 %v59_v15 }
  0x2b   :  { %101 = vmatpush1.msra.mxu0 %v58_v16 }
  0x2c   :  { %102 = vmatprep.subr.mxu0 %v57_v17 }
  0x2d   :  { %103 = vmatpush1.msra.mxu0 %v56_v18 }
  0x2e   :  { %104 = vmatprep.subr.mxu0 %v55_v19 }
  0x2f   :  { %105 = vmatpush1.msra.mxu0 %v54_v20 }
  0x30   :  { %106 = vmatprep.subr.mxu0 %v53_v21 }
  0x31   :  { %107 = vmatpush1.msra.mxu0 %v52_v22 }
  0x32   :  { %108 = vmatprep.subr.mxu0 %v51_v23 }
  0x33   :  { %109 = vmatpush1.msra.mxu0 %v50_v24 }
  0x34   :  { %110 = vmatprep.subr.mxu0 %v49_v25 }
  0x35   :  { %111 = vmatpush1.msra.mxu0 %v48_v26 }
  0x36   :  { %112 = vmatprep.subr.mxu0 %v47_v27 }
  0x37   :  { %113 = vmatpush1.msra.mxu0 %v46_v28 }
  0x38   :  { %114 = vmatprep.subr.mxu0 %v45_v29 }
  0x39   :  { %115 = vmatpush1.msra.mxu0 %v44_v30 }
  0x3a   :  { %116 = vmatprep.subr.mxu0 %v43_v31 }
  0x3b   :  { %117 = vmatpush1.msra.mxu0 %v42_v32 }
  0x3c   :  { %151 = vmatmul.mubr.f32.vlgmr.msra.gmra.mxu0 %v41_v33 }
  0xfc   :  { %v152_v44 = vpop.f32.mrf.mxu0 }
  0xfd   :  { %v153_v46 = vadd.f32 %v152_v44, %v79_v41 }
  0xfe   :  { %v154_v45 = vpop.f32.mrf.mxu0 }
  0xff   :  { %v155_v47 = vadd.f32 %v154_v45, %v83_v42 }
 0x101   :  { %v159_v49 = vcombine.low %v153_v46, %v155_v47 }
 0x103   :  { %v166_v50 = vrot.slane %v159_v49, %v165_v48 }
 0x105   :  { %v173_v51 = vrot.slane %v166_v50, %v165_v48 }
 0x107   :  { %179 = vst.msk [vmem:[#allocation7] sm:$0x3] %vm177_vm0, %v173_v51 }
 0x108   :  { %254 = shalt.err (!%p251_p0)
}
 0x109   :  { %189 = dma.vmem_to_hbm [thread:$0]  %s187_s26, 32, %s311_s3, [#allocation4]  }
 0x10a   :  { %267 = dma.done.wait [#allocation4], 32  }
 0x10b   :  { %268 = vsyncadd [#allocation4], 4294967264 }
 0x10c   :  { %193 = vsyncpa [#allocation3], 1 }
 0x10d   :  { %194 = vsyncpa [#allocation6], 1 }
 0x10e   :  { %195 = vsyncpa [#allocation4], 1 }

</bundles_post_ra>
